<compile_context>
chip_gen: v7x
topology: tpu7x:2x2x1
jax: 0.10.0
libtpu: 0.0.40
codegen_flags: <defaults>
</compile_context>

<pallas_src>
import jax
import jax.numpy as jnp
from jax.experimental import pallas as pl
from jax.experimental.pallas import tpu as pltpu


def _round_up(x, m):
    return ((x + m - 1) // m) * m


# ----------------------------------------------------------------------------
# Kernel
# ----------------------------------------------------------------------------
def vae_forward_kernel(
    x_ref, mult_ref,
    w1_ref, b1_ref,        # img  -> hid
    wms_ref, bms_ref,      # hid  -> [mu | sigma | 0]   (fused, single 128-lane slab)
    w4d_ref, b4_ref,       # [W4 ; W4 ; 0] -> hid       (row-duplicated z_2hid)
    w5_ref, b5_ref,        # hid  -> img
    xrec_ref, musig_ref,
):
    x = x_ref[...]                         # [TB, D_p] bf16 (already cast in wrapper)

    # ---- encode ---- (bf16 MXU operands, f32 accumulation; elementwise in f32)
    h = jnp.dot(x, w1_ref[...], preferred_element_type=jnp.float32) + b1_ref[...]
    h = jnp.maximum(h, 0.0)                                   # ReLU

    musig = jnp.dot(h.astype(jnp.bfloat16), wms_ref[...],
                    preferred_element_type=jnp.float32) + bms_ref[...]
    # musig lanes: [mu (0:L) | sigma (L:2L) | zeros]

    # ---- reparametrize (no cross-lane movement) ----
    # mult = [1..1 (L) | eps (L) | 0..0]  ->  t = [mu | sigma*eps | 0]
    # w4d rows are [W4 ; W4 ; 0], so t @ w4d == (mu + sigma*eps) @ W4.
    t = musig * mult_ref[...]

    # ---- decode ----
    h2 = jnp.dot(t.astype(jnp.bfloat16), w4d_ref[...],
                 preferred_element_type=jnp.float32) + b4_ref[...]
    h2 = jnp.maximum(h2, 0.0)              # ReLU

    logits = jnp.dot(h2.astype(jnp.bfloat16), w5_ref[...],
                     preferred_element_type=jnp.float32) + b5_ref[...]

    xrec_ref[...] = jax.nn.sigmoid(logits).astype(xrec_ref.dtype)
    musig_ref[...] = musig.astype(musig_ref.dtype)


# ----------------------------------------------------------------------------
# Parameter packing (pad feature dims to 128 multiples, fuse mu/sigma, bf16)
# ----------------------------------------------------------------------------
def pack_params(params):
    """Weights stored [in, out]; mu/sigma projections fused into one lane-dense
    slab of width round_up(2*output_dim, 128); z_2hid rows duplicated so the
    reparametrized sample never needs a cross-lane shift inside the kernel."""
    input_dim, hidden_dim = params["w_img2hid"].shape
    output_dim = params["w_hid2mu"].shape[1]
    L = output_dim
    D_p = _round_up(input_dim, 128)
    H_p = _round_up(hidden_dim, 128)
    MS_p = _round_up(2 * output_dim, 128)

    def pad_to(a, rows, cols):
        return jnp.pad(a, ((0, rows - a.shape[0]), (0, cols - a.shape[1])))

    wms = jnp.zeros((hidden_dim, MS_p), jnp.float32)
    wms = wms.at[:, :L].set(params["w_hid2mu"]).at[:, L:2 * L].set(params["w_hid2sigma"])
    wms = jnp.pad(wms, ((0, H_p - hidden_dim), (0, 0)))

    bms = jnp.zeros((1, MS_p), jnp.float32)
    bms = bms.at[:, :L].set(params["b_hid2mu"]).at[:, L:2 * L].set(params["b_hid2sigma"])

    # Row-duplicated decoder input weight: [W4 ; W4 ; 0...]
    w4d = jnp.zeros((MS_p, hidden_dim), jnp.float32)
    w4d = w4d.at[:L].set(params["w_z2hid"]).at[L:2 * L].set(params["w_z2hid"])
    w4d = jnp.pad(w4d, ((0, 0), (0, H_p - hidden_dim)))

    return {
        "w1": pad_to(params["w_img2hid"], D_p, H_p).astype(jnp.bfloat16),
        "b1": pad_to(params["b_img2hid"], 1, H_p).astype(jnp.float32),
        "wms": wms.astype(jnp.bfloat16),
        "bms": bms.astype(jnp.float32),
        "w4d": w4d.astype(jnp.bfloat16),
        "b4": pad_to(params["b_z2hid"], 1, H_p).astype(jnp.float32),
        "w5": pad_to(params["w_hid2img"], H_p, D_p).astype(jnp.bfloat16),
        "b5": pad_to(params["b_hid2img"], 1, D_p).astype(jnp.float32),
    }


def _vmem_limit_bytes(TB, D_p, H_p, MS_p):
    # Resident weights (bf16) + biases (f32), double-buffered streamed tiles,
    # f32 intermediates, plus headroom.  Clamp to v7x's scoped default (32 MiB,
    # physical VMEM is 64 MiB there vs 128 MiB on v5e/v6e).
    weights = 2 * (D_p * H_p + H_p * MS_p + MS_p * H_p + H_p * D_p) \
              + 4 * (2 * H_p + MS_p + D_p)
    tiles = TB * (2 * D_p + 4 * MS_p + 4 * D_p + 4 * MS_p)
    interm = TB * 4 * (2 * H_p + MS_p + D_p)
    est = 2 * weights + 2 * tiles + interm + (4 << 20)
    return int(min(max(est, 16 << 20), 32 << 20))


# ----------------------------------------------------------------------------
# Wrapper
# ----------------------------------------------------------------------------
def vae_forward(x, eps, packed, out_dtype=jnp.float32):
    """VAE forward pass.

    Args:
      x:      [B, input_dim] float
      eps:    [B, output_dim] standard-normal noise (torch.randn_like equivalent)
      packed: output of pack_params
      out_dtype: dtype of the reconstruction output (jnp.bfloat16 halves HBM
        writeback for inference; f32 default keeps full fidelity).
    Returns:
      (x_reconstructed [B, input_dim], mu [B, output_dim], sigma [B, output_dim])
    """
    B, input_dim = x.shape
    L = eps.shape[1]
    D_p, H_p = packed["w1"].shape
    MS_p = packed["wms"].shape[1]

    # Batch tiling: up to 512 rows/step (HBM-bound -> amortize per-step overhead),
    # 16-row granularity so bf16 tiles satisfy sublane-packing constraints.
    TB_MAX = 512
    n_b = -(-B // TB_MAX)
    TB = _round_up(-(-B // n_b), 16)
    B_p = TB * n_b

    # x streamed in bf16 (numerically identical: kernel used bf16 MXU operands anyway).
    x_p = jnp.pad(x.astype(jnp.bfloat16), ((0, B_p - B), (0, D_p - input_dim)))
    # Reparametrization multiplier slab: [1..1 (L) | eps (L) | 0...] per row.
    mult = jnp.concatenate(
        [jnp.ones((B, L), jnp.float32), eps.astype(jnp.float32)], axis=1)
    mult_p = jnp.pad(mult, ((0, B_p - B), (0, MS_p - 2 * L)))

    def tile_spec(cols):
        # Streamed over the batch grid, software-pipelined.
        return pl.BlockSpec((TB, cols), lambda i: (i, 0))

    def resident_spec(shape):
        # Weights/biases: constant block index -> stay resident in VMEM.
        return pl.BlockSpec(shape, lambda i: (0, 0))

    in_specs = [
        tile_spec(D_p),                          # x (bf16)
        tile_spec(MS_p),                         # mult ([1|eps|0], f32)
        resident_spec(packed["w1"].shape), resident_spec(packed["b1"].shape),
        resident_spec(packed["wms"].shape), resident_spec(packed["bms"].shape),
        resident_spec(packed["w4d"].shape), resident_spec(packed["b4"].shape),
        resident_spec(packed["w5"].shape), resident_spec(packed["b5"].shape),
    ]
    out_shape = (
        jax.ShapeDtypeStruct((B_p, D_p), out_dtype),         # reconstruction
        jax.ShapeDtypeStruct((B_p, MS_p), jnp.float32),      # [mu | sigma | 0] slab
    )
    out_specs = (tile_spec(D_p), tile_spec(MS_p))

    xrec_p, musig_p = pl.pallas_call(
        vae_forward_kernel,
        out_shape=out_shape,
        grid=(n_b,),
        in_specs=in_specs,
        out_specs=out_specs,
        compiler_params=pltpu.CompilerParams(
            dimension_semantics=("parallel",),   # batch tiles independent
            vmem_limit_bytes=_vmem_limit_bytes(TB, D_p, H_p, MS_p),
        ),
    )(x_p, mult_p,
      packed["w1"], packed["b1"],
      packed["wms"], packed["bms"],
      packed["w4d"], packed["b4"],
      packed["w5"], packed["b5"])

    x_rec = xrec_p[:B, :input_dim]
    mu = musig_p[:B, :L]
    sigma = musig_p[:B, L:2 * L]
    return x_rec, mu, sigma


# ----------------------------------------------------------------------------
# Parameter init & references
# ----------------------------------------------------------------------------
def init_params(key, input_dim, hidden_dim, output_dim):
    """Weights stored [in, out]; biases [1, out] (torch.nn.Linear-like init)."""
    ks = jax.random.split(key, 10)

    def linear(kw, kb, d_in, d_out):
        bound = 1.0 / jnp.sqrt(d_in)
        w = jax.random.uniform(kw, (d_in, d_out), jnp.float32, -bound, bound)
        b = jax.random.uniform(kb, (1, d_out), jnp.float32, -bound, bound)
        return w, b

    w1, b1 = linear(ks[0], ks[1], input_dim, hidden_dim)       # img_2hid
    w2, b2 = linear(ks[2], ks[3], hidden_dim, output_dim)      # hid_2mu
    w3, b3 = linear(ks[4], ks[5], hidden_dim, output_dim)      # hid_2sigma
    w4, b4 = linear(ks[6], ks[7], output_dim, hidden_dim)      # z_2hid
    w5, b5 = linear(ks[8], ks[9], hidden_dim, input_dim)       # hid_2img

    return {
        "w_img2hid": w1, "b_img2hid": b1,
        "w_hid2mu": w2, "b_hid2mu": b2,
        "w_hid2sigma": w3, "b_hid2sigma": b3,
        "w_z2hid": w4, "b_z2hid": b4,
        "w_hid2img": w5, "b_hid2img": b5,
    }


def vae_forward_ref(x, eps, p, matmul_dtype=jnp.float32):
    """Pure-JAX reference matching the PyTorch forward.

    With matmul_dtype=bfloat16 it mimics the kernel's MXU numerics (bf16
    operands, f32 accumulation); with float32 it is the exact module.
    """
    def mm(a, w):
        return jnp.dot(a.astype(matmul_dtype), w.astype(matmul_dtype),
                       preferred_element_type=jnp.float32)

    h = jnp.maximum(mm(x, p["w_img2hid"]) + p["b_img2hid"], 0.0)
    mu = mm(h, p["w_hid2mu"]) + p["b_hid2mu"]
    sigma = mm(h, p["w_hid2sigma"]) + p["b_hid2sigma"]
    z = mu + sigma * eps
    h2 = jnp.maximum(mm(z, p["w_z2hid"]) + p["b_z2hid"], 0.0)
    x_rec = jax.nn.sigmoid(mm(h2, p["w_hid2img"]) + p["b_hid2img"])
    return x_rec, mu, sigma


# ----------------------------------------------------------------------------
# Main
# ----------------------------------------------------------------------------
if __name__ == "__main__":
    # Small, module-consistent shapes: x is [batch_size, input_dim].
    batch_size = 8
    input_dim = 256
    hidden_dim = 64
    output_dim = 32

    key = jax.random.PRNGKey(0)
    k_params, k_x, k_eps = jax.random.split(key, 3)

    params = init_params(k_params, input_dim, hidden_dim, output_dim)
    x = jax.random.uniform(k_x, (batch_size, input_dim), jnp.float32)
    # epsilon ~ N(0, 1), same role as torch.randn_like(sigma)
    eps = jax.random.normal(k_eps, (batch_size, output_dim), jnp.float32)

    packed = pack_params(params)

    fwd = jax.jit(vae_forward)
    x_rec, mu, sigma = fwd(x, eps, packed)
    jax.block_until_ready((x_rec, mu, sigma))

    assert x_rec.shape == (batch_size, input_dim)
    assert mu.shape == (batch_size, output_dim)
    assert sigma.shape == (batch_size, output_dim)

    # Check vs a reference that mimics the kernel's bf16-operand / f32-acc matmuls.
    # mu/sigma follow the identical compute path -> tight tolerance; x_rec differs
    # only in where the bf16 rounding of the reparametrized sample happens.
    x_rec_b, mu_b, sigma_b = vae_forward_ref(x, eps, params, matmul_dtype=jnp.bfloat16)
    assert jnp.allclose(mu, mu_b, atol=1e-4, rtol=1e-3), "mu mismatch (bf16 ref)"
    assert jnp.allclose(sigma, sigma_b, atol=1e-4, rtol=1e-3), "sigma mismatch (bf16 ref)"
    assert jnp.allclose(x_rec, x_rec_b, atol=2e-2, rtol=1e-2), "x_rec mismatch (bf16 ref)"

    # Loose sanity check vs the exact f32 PyTorch-equivalent forward
    # (difference is only the bf16 matmul-operand cast).
    x_rec_f, mu_f, sigma_f = vae_forward_ref(x, eps, params)
    assert jnp.allclose(x_rec, x_rec_f, atol=1e-1, rtol=0.0), "x_rec far from f32 ref"
    assert jnp.allclose(mu, mu_f, atol=1e-1, rtol=0.0), "mu far from f32 ref"
    assert jnp.allclose(sigma, sigma_f, atol=1e-1, rtol=0.0), "sigma far from f32 ref"

    print("KERNEL_OK")
</pallas_src>

<mosaic_0001>
module attributes {stable_mosaic.version = 11 : i64} {
  func.func @vae_forward_kernel(%arg0: i32, %arg1: memref<16x256xbf16, #tpu.memory_space<vmem>>, %arg2: memref<16x128xf32, #tpu.memory_space<vmem>>, %arg3: memref<256x128xbf16, #tpu.memory_space<vmem>>, %arg4: memref<1x128xf32, #tpu.memory_space<vmem>>, %arg5: memref<128x128xbf16, #tpu.memory_space<vmem>>, %arg6: memref<1x128xf32, #tpu.memory_space<vmem>>, %arg7: memref<128x128xbf16, #tpu.memory_space<vmem>>, %arg8: memref<1x128xf32, #tpu.memory_space<vmem>>, %arg9: memref<128x256xbf16, #tpu.memory_space<vmem>>, %arg10: memref<1x256xf32, #tpu.memory_space<vmem>>, %arg11: memref<16x256xf32, #tpu.memory_space<vmem>>, %arg12: memref<16x128xf32, #tpu.memory_space<vmem>>) attributes {dimension_semantics = [#tpu.dimension_semantics<parallel>], iteration_bounds = array<i64: 1>, scalar_prefetch = 0 : i64, scratch_operands = 0 : i64, tpu.core_type = #tpu.core_type<tc>, window_params = [{transform_indices = @transform_0, window_bounds = array<i64: 16, 256>}, {transform_indices = @transform_1, window_bounds = array<i64: 16, 128>}, {pipeline_mode = #tpu.pipeline_mode<synchronous>, transform_indices = @transform_2, window_bounds = array<i64: 256, 128>}, {pipeline_mode = #tpu.pipeline_mode<synchronous>, transform_indices = @transform_3, window_bounds = array<i64: 1, 128>}, {pipeline_mode = #tpu.pipeline_mode<synchronous>, transform_indices = @transform_4, window_bounds = array<i64: 128, 128>}, {pipeline_mode = #tpu.pipeline_mode<synchronous>, transform_indices = @transform_5, window_bounds = array<i64: 1, 128>}, {pipeline_mode = #tpu.pipeline_mode<synchronous>, transform_indices = @transform_6, window_bounds = array<i64: 128, 128>}, {pipeline_mode = #tpu.pipeline_mode<synchronous>, transform_indices = @transform_7, window_bounds = array<i64: 1, 128>}, {pipeline_mode = #tpu.pipeline_mode<synchronous>, transform_indices = @transform_8, window_bounds = array<i64: 128, 256>}, {pipeline_mode = #tpu.pipeline_mode<synchronous>, transform_indices = @transform_9, window_bounds = array<i64: 1, 256>}, {transform_indices = @transform_10, window_bounds = array<i64: 16, 256>}, {transform_indices = @transform_11, window_bounds = array<i64: 16, 128>}]} {
    %c0 = arith.constant 0 : index
    %c0_0 = arith.constant 0 : index
    %0 = vector.load %arg1[%c0, %c0_0] : memref<16x256xbf16, #tpu.memory_space<vmem>>, vector<16x256xbf16>
    %c0_1 = arith.constant 0 : index
    %c0_2 = arith.constant 0 : index
    %1 = vector.load %arg3[%c0_1, %c0_2] : memref<256x128xbf16, #tpu.memory_space<vmem>>, vector<256x128xbf16>
    %cst = arith.constant dense<0.000000e+00> : vector<16x128xf32>
    %2 = tpu.matmul %0, %1, %cst {dimension_numbers = #tpu.dot_dimension_numbers<[1], [0], [0], [1], [0, 0, 1, 1], [], []>} : vector<16x256xbf16>, vector<256x128xbf16>, vector<16x128xf32> -> vector<16x128xf32>
    %c0_3 = arith.constant 0 : index
    %c0_4 = arith.constant 0 : index
    %3 = vector.load %arg4[%c0_3, %c0_4] : memref<1x128xf32, #tpu.memory_space<vmem>>, vector<1x128xf32>
    %4 = vector.broadcast %3 : vector<1x128xf32> to vector<16x128xf32>
    %5 = arith.addf %2, %4 : vector<16x128xf32>
    %cst_5 = arith.constant 0.000000e+00 : f32
    %6 = vector.broadcast %cst_5 : f32 to vector<16x128xf32>
    %7 = arith.maximumf %5, %6 : vector<16x128xf32>
    %8 = arith.truncf %7 : vector<16x128xf32> to vector<16x128xbf16>
    %c0_6 = arith.constant 0 : index
    %c0_7 = arith.constant 0 : index
    %9 = vector.load %arg5[%c0_6, %c0_7] : memref<128x128xbf16, #tpu.memory_space<vmem>>, vector<128x128xbf16>
    %cst_8 = arith.constant dense<0.000000e+00> : vector<16x128xf32>
    %10 = tpu.matmul %8, %9, %cst_8 {dimension_numbers = #tpu.dot_dimension_numbers<[1], [0], [0], [1], [0, 0, 1, 1], [], []>} : vector<16x128xbf16>, vector<128x128xbf16>, vector<16x128xf32> -> vector<16x128xf32>
    %c0_9 = arith.constant 0 : index
    %c0_10 = arith.constant 0 : index
    %11 = vector.load %arg6[%c0_9, %c0_10] : memref<1x128xf32, #tpu.memory_space<vmem>>, vector<1x128xf32>
    %12 = vector.broadcast %11 : vector<1x128xf32> to vector<16x128xf32>
    %13 = arith.addf %10, %12 : vector<16x128xf32>
    %c0_11 = arith.constant 0 : index
    %c0_12 = arith.constant 0 : index
    %14 = vector.load %arg2[%c0_11, %c0_12] : memref<16x128xf32, #tpu.memory_space<vmem>>, vector<16x128xf32>
    %15 = arith.mulf %13, %14 : vector<16x128xf32>
    %16 = arith.truncf %15 : vector<16x128xf32> to vector<16x128xbf16>
    %c0_13 = arith.constant 0 : index
    %c0_14 = arith.constant 0 : index
    %17 = vector.load %arg7[%c0_13, %c0_14] : memref<128x128xbf16, #tpu.memory_space<vmem>>, vector<128x128xbf16>
    %cst_15 = arith.constant dense<0.000000e+00> : vector<16x128xf32>
    %18 = tpu.matmul %16, %17, %cst_15 {dimension_numbers = #tpu.dot_dimension_numbers<[1], [0], [0], [1], [0, 0, 1, 1], [], []>} : vector<16x128xbf16>, vector<128x128xbf16>, vector<16x128xf32> -> vector<16x128xf32>
    %c0_16 = arith.constant 0 : index
    %c0_17 = arith.constant 0 : index
    %19 = vector.load %arg8[%c0_16, %c0_17] : memref<1x128xf32, #tpu.memory_space<vmem>>, vector<1x128xf32>
    %20 = vector.broadcast %19 : vector<1x128xf32> to vector<16x128xf32>
    %21 = arith.addf %18, %20 : vector<16x128xf32>
    %cst_18 = arith.constant 0.000000e+00 : f32
    %22 = vector.broadcast %cst_18 : f32 to vector<16x128xf32>
    %23 = arith.maximumf %21, %22 : vector<16x128xf32>
    %24 = arith.truncf %23 : vector<16x128xf32> to vector<16x128xbf16>
    %c0_19 = arith.constant 0 : index
    %c0_20 = arith.constant 0 : index
    %25 = vector.load %arg9[%c0_19, %c0_20] : memref<128x256xbf16, #tpu.memory_space<vmem>>, vector<128x256xbf16>
    %cst_21 = arith.constant dense<0.000000e+00> : vector<16x256xf32>
    %26 = tpu.matmul %24, %25, %cst_21 {dimension_numbers = #tpu.dot_dimension_numbers<[1], [0], [0], [1], [0, 0, 1, 1], [], []>} : vector<16x128xbf16>, vector<128x256xbf16>, vector<16x256xf32> -> vector<16x256xf32>
    %c0_22 = arith.constant 0 : index
    %c0_23 = arith.constant 0 : index
    %27 = vector.load %arg10[%c0_22, %c0_23] : memref<1x256xf32, #tpu.memory_space<vmem>>, vector<1x256xf32>
    %28 = vector.broadcast %27 : vector<1x256xf32> to vector<16x256xf32>
    %29 = arith.addf %26, %28 : vector<16x256xf32>
    %30 = arith.negf %29 : vector<16x256xf32>
    %31 = math.exp %30 : vector<16x256xf32>
    %cst_24 = arith.constant 1.000000e+00 : f32
    %32 = vector.broadcast %cst_24 : f32 to vector<16x256xf32>
    %33 = arith.addf %32, %31 : vector<16x256xf32>
    %34 = arith.divf %32, %33 : vector<16x256xf32>
    %c0_25 = arith.constant 0 : index
    %c0_26 = arith.constant 0 : index
    %35 = vector.load %arg11[%c0_25, %c0_26] : memref<16x256xf32, #tpu.memory_space<vmem>>, vector<16x256xf32>
    tpu.vector_store %arg11[%c0_25, %c0_26], %34 {strides = array<i32>} : memref<16x256xf32, #tpu.memory_space<vmem>>, vector<16x256xf32>,
    %c0_27 = arith.constant 0 : index
    %c0_28 = arith.constant 0 : index
    %36 = vector.load %arg12[%c0_27, %c0_28] : memref<16x128xf32, #tpu.memory_space<vmem>>, vector<16x128xf32>
    tpu.vector_store %arg12[%c0_27, %c0_28], %13 {strides = array<i32>} : memref<16x128xf32, #tpu.memory_space<vmem>>, vector<16x128xf32>,
    return
  }
  func.func @transform_0(%arg0: i32) -> (i32, i32) {
    %c0_i32 = arith.constant 0 : i32
    %c0_i32_0 = arith.constant 0 : i32
    return %arg0, %c0_i32 : i32, i32
  }
  func.func @transform_1(%arg0: i32) -> (i32, i32) {
    %c0_i32 = arith.constant 0 : i32
    %c0_i32_0 = arith.constant 0 : i32
    return %arg0, %c0_i32 : i32, i32
  }
  func.func @transform_2(%arg0: i32) -> (i32, i32) {
    %c0_i32 = arith.constant 0 : i32
    %c0_i32_0 = arith.constant 0 : i32
    %c0_i32_1 = arith.constant 0 : i32
    return %c0_i32, %c0_i32_0 : i32, i32
  }
  func.func @transform_3(%arg0: i32) -> (i32, i32) {
    %c0_i32 = arith.constant 0 : i32
    %c0_i32_0 = arith.constant 0 : i32
    %c0_i32_1 = arith.constant 0 : i32
    return %c0_i32, %c0_i32_0 : i32, i32
  }
  func.func @transform_4(%arg0: i32) -> (i32, i32) {
    %c0_i32 = arith.constant 0 : i32
    %c0_i32_0 = arith.constant 0 : i32
    %c0_i32_1 = arith.constant 0 : i32
    return %c0_i32, %c0_i32_0 : i32, i32
  }
  func.func @transform_5(%arg0: i32) -> (i32, i32) {
    %c0_i32 = arith.constant 0 : i32
    %c0_i32_0 = arith.constant 0 : i32
    %c0_i32_1 = arith.constant 0 : i32
    return %c0_i32, %c0_i32_0 : i32, i32
  }
  func.func @transform_6(%arg0: i32) -> (i32, i32) {
    %c0_i32 = arith.constant 0 : i32
    %c0_i32_0 = arith.constant 0 : i32
    %c0_i32_1 = arith.constant 0 : i32
    return %c0_i32, %c0_i32_0 : i32, i32
  }
  func.func @transform_7(%arg0: i32) -> (i32, i32) {
    %c0_i32 = arith.constant 0 : i32
    %c0_i32_0 = arith.constant 0 : i32
    %c0_i32_1 = arith.constant 0 : i32
    return %c0_i32, %c0_i32_0 : i32, i32
  }
  func.func @transform_8(%arg0: i32) -> (i32, i32) {
    %c0_i32 = arith.constant 0 : i32
    %c0_i32_0 = arith.constant 0 : i32
    %c0_i32_1 = arith.constant 0 : i32
    return %c0_i32, %c0_i32_0 : i32, i32
  }
  func.func @transform_9(%arg0: i32) -> (i32, i32) {
    %c0_i32 = arith.constant 0 : i32
    %c0_i32_0 = arith.constant 0 : i32
    %c0_i32_1 = arith.constant 0 : i32
    return %c0_i32, %c0_i32_0 : i32, i32
  }
  func.func @transform_10(%arg0: i32) -> (i32, i32) {
    %c0_i32 = arith.constant 0 : i32
    %c0_i32_0 = arith.constant 0 : i32
    return %arg0, %c0_i32 : i32, i32
  }
  func.func @transform_11(%arg0: i32) -> (i32, i32) {
    %c0_i32 = arith.constant 0 : i32
    %c0_i32_0 = arith.constant 0 : i32
    return %arg0, %c0_i32 : i32, i32
  }
}

</mosaic_0001>

<bundles_post_ra>
// kernel: vae_forward.1
= control target key start
LH: loop header
LB: loop body
LE: loop exit
PB: predicated region body
PF: predicated region fallthrough
CT: control target
= control target key end

     0   :  { %17 = vsyncpa [#allocation3], 0  ;;  %s1182_s0 = inlined_call_operand.vmem [shape: bf16[16,256], index: 0, kind: input, shape index: {}]   ;;  %s1183_s1 = inlined_call_operand.vmem [shape: f32[16,128], index: 1, kind: input, shape index: {}]   ;;  %s1184_s2 = inlined_call_operand.hbm [shape: bf16[256,128], index: 2, kind: input, shape index: {}]   ;;  %s1185_s3 = inlined_call_operand.vmem [shape: f32[1,128], index: 3, kind: input, shape index: {}]   ;;  %s1186_s4 = inlined_call_operand.vmem [shape: bf16[128,128], index: 4, kind: input, shape index: {}]   ;;  %s1187_s5 = inlined_call_operand.vmem [shape: f32[1,128], index: 5, kind: input, shape index: {}]   ;;  %s1188_s6 = inlined_call_operand.hbm [shape: bf16[128,128], index: 6, kind: input, shape index: {}]   ;;  %s1189_s7 = inlined_call_operand.vmem [shape: f32[1,128], index: 7, kind: input, shape index: {}]   ;;  %s1190_s8 = inlined_call_operand.hbm [shape: bf16[128,256], index: 8, kind: input, shape index: {}]   ;;  %s1191_s9 = inlined_call_operand.vmem [shape: f32[1,256], index: 9, kind: input, shape index: {}]   ;;  %s1192_s10 = inlined_call_operand.vmem [shape: f32[16,256], index: 10, kind: output, shape index: {0}]   ;;  %s1193_s11 = inlined_call_operand.vmem [shape: f32[16,128], index: 11, kind: output, shape index: {1}]  }
   0x1   :  { %18 = vsyncpa [#allocation5], 0  ;;  %s985_s17 = smov [#allocation4]   ;;  %s986_s19 = smov [#allocation2]  }
   0x2   :  { %s46_s18 = sshll.u32 %s985_s17, 4  ;;  %s28_s20 = sshll.u32 %s986_s19, 4  ;;  %s47_s18 = int_to_ptr.vmem [resolvable:$true] %s46_s18  ;;  %s1055_s20 = int_to_ptr.vmem [resolvable:$true] %s28_s20 }
   0x3   :  { %s915_s23 = scalar_lea.hbm %s1188_s6, 1024 }
   0x4   :  { %p916_p0 = scmp.ne.s32.totalorder %s1188_s6, %s915_s23  ;;  %p919_p1 = scmp.lt.u32.totalorder %s915_s23, %s1188_s6 }
   0x6   :  { %p921_p2 = pnand %p919_p1, %p916_p0 }
   0x8   :  { %924 = shalt.err (!%p921_p2)
}
   0x9   :  { %s925_s28 = scalar_lea.vmem %s47_s18, 1024  ;;  %p930_p4 = scmp.lt.s32.totalorder %s47_s18, %s47_s18 }
   0xa   :  { %p926_p3 = scmp.ne.s32.totalorder %s47_s18, %s925_s28  ;;  %p931_p5 = scmp.lt.s32.totalorder %s925_s28, %s925_s28 }
   0xc   :  { %p932_p6 = por %p931_p5, %p930_p4 }
   0xe   :  { %p933_p7 = pnand %p932_p6, %p926_p3 }
  0x10   :  { %936 = shalt.err (!%p933_p7)
}
  0x11   :  { %s987_s29 = smov 64   ;;  %s988_s30 = smov 4  }
  0x12   :  { %52 = dma.hbm_to_vmem [thread:$0]  %s1188_s6, 1024, %s47_s18, [#allocation5], %s987_s29, %s987_s29, %s988_s30  }
  0x13   :  { %s937_s16 = scalar_lea.hbm %s1184_s2, 2048 }
  0x14   :  { %p938_p8 = scmp.ne.s32.totalorder %s1184_s2, %s937_s16  ;;  %p941_p9 = scmp.lt.u32.totalorder %s937_s16, %s1184_s2 }
  0x16   :  { %p943_p10 = pnand %p941_p9, %p938_p8 }
  0x18   :  { %946 = shalt.err (!%p943_p10)
}
  0x19   :  { %s947_s23 = scalar_lea.vmem %s1055_s20, 2048  ;;  %p952_p12 = scmp.lt.s32.totalorder %s1055_s20, %s1055_s20 }
  0x1a   :  { %p948_p11 = scmp.ne.s32.totalorder %s1055_s20, %s947_s23  ;;  %p953_p13 = scmp.lt.s32.totalorder %s947_s23, %s947_s23 }
  0x1c   :  { %p954_p0 = por %p953_p13, %p952_p12 }
  0x1e   :  { %p955_p1 = pnand %p954_p0, %p948_p11 }
  0x20   :  { %958 = shalt.err (!%p955_p1)
}
  0x21   :  { %34 = dma.hbm_to_vmem [thread:$0]  %s1184_s2, 2048, %s1055_s20, [#allocation3], %s987_s29, %s987_s29, %s988_s30  }
  0x22   :  { %s989_s24 = smov [#allocation6]   ;;  %s959_s28 = scalar_lea.hbm %s1190_s8, 2048 }
  0x23   :  { %s60_s25 = sshll.u32 %s989_s24, 4  ;;  %p960_p2 = scmp.ne.s32.totalorder %s1190_s8, %s959_s28  ;;  %s61_s25 = int_to_ptr.vmem [resolvable:$true] %s60_s25 }
  0x24   :  { %p963_p3 = scmp.lt.u32.totalorder %s959_s28, %s1190_s8 }
  0x26   :  { %p965_p4 = pnand %p963_p3, %p960_p2 }
  0x28   :  { %968 = shalt.err (!%p965_p4)
}
  0x29   :  { %s969_s16 = scalar_lea.vmem %s61_s25, 2048  ;;  %p974_p6 = scmp.lt.s32.totalorder %s61_s25, %s61_s25 }
  0x2a   :  { %p970_p5 = scmp.ne.s32.totalorder %s61_s25, %s969_s16  ;;  %p975_p7 = scmp.lt.s32.totalorder %s969_s16, %s969_s16 }
  0x2c   :  { %p976_p8 = por %p975_p7, %p974_p6 }
  0x2e   :  { %p977_p9 = pnand %p976_p8, %p970_p5 }
  0x30   :  { %980 = shalt.err (!%p977_p9)
}
  0x31   :  { %s990_s2 = smov 128   ;;  %s991_s20 = smov 8  }
  0x32   :  { %66 = dma.hbm_to_vmem [thread:$0]  %s1190_s8, 2048, %s61_s25, [#allocation5], %s990_s2, %s990_s2, %s991_s20  }
  0x33   :  { %981 = dma.done.wait [#allocation3], 2048  }
  0x34   :  { %982 = vsyncadd [#allocation3], 4294965248 }
  0x35   :  { %983 = dma.done.wait [#allocation5], 3072  }
  0x36   :  { %984 = vsyncadd [#allocation5], 4294964224  ;;  %v992_v0 = vmov 0.0   ;;  %v840_v1 = vld [vmem:[#allocation2 + $0x40] sm:$0xff]   ;;  %v842_v3 = vld [vmem:[#allocation2 + $0x48] sm:$0xff]   ;;  %vm993_vm0 = vmmov 0  }
  0x37   :  { %790 = vmatprep.subr.bf16.mxu1 %v992_v0  ;;  %v841_v2 = vld [vmem:[#allocation2] sm:$0xff]   ;;  %750 = vmatprep.subr.bf16.mxu0 %v840_v1  ;;  %v843_v4 = vld [vmem:[#allocation2 + $0x8] sm:$0xff]   ;;  %v844_v5 = vld [vmem:[#allocation2 + $0x50] sm:$0xff]  }
  0x38   :  { %751 = vmatpush3.bf16.msra.mxu0 %v841_v2  ;;  %v845_v6 = vld [vmem:[#allocation2 + $0x10] sm:$0xff]   ;;  %v846_v7 = vld [vmem:[#allocation2 + $0x58] sm:$0xff]   ;;  %v848_v9 = vld [vmem:[#allocation2 + $0x60] sm:$0xff]   ;;  %806 = vmatprep.mubr.msk.bf16.mxu1 %vm993_vm0, %v992_v0 }
  0x39   :  { %752 = vmatprep.subr.bf16.mxu0 %v842_v3  ;;  %v847_v8 = vld [vmem:[#allocation2 + $0x18] sm:$0xff]   ;;  %v849_v10 = vld [vmem:[#allocation2 + $0x20] sm:$0xff]   ;;  %v850_v11 = vld [vmem:[#allocation2 + $0x68] sm:$0xff]  }
  0x3a   :  { %v851_v12 = vld [vmem:[#allocation2 + $0x28] sm:$0xff]   ;;  %v859_v14 = vld [vmem:[%s1186_s4] sm:$0xff]   ;;  %v852_v15 = vld [vmem:[#allocation2 + $0x70] sm:$0xff]  }
  0x3b   :  { %v858_v13 = vld [vmem:[%s1182_s0 + $0x4] ss:$8 sps:$4 sm:$0xff]   ;;  %791 = vmatpush3.bf16.msra.mxu1 %v859_v14  ;;  %v853_v17 = vld [vmem:[#allocation2 + $0x30] sm:$0xff]   ;;  %v854_v18 = vld [vmem:[#allocation2 + $0x78] sm:$0xff]  }
  0x3c   :  { %753 = vmatpush3.bf16.msra.mxu0 %v843_v4  ;;  %258 = vmatprep.mubr.bf16.mxu0 %v858_v13  ;;  %v860_v16 = vld [vmem:[%s1186_s4 + $0x8] sm:$0xff]   ;;  %v861_v19 = vld [vmem:[%s1186_s4 + $0x10] sm:$0xff]   ;;  %v855_v20 = vld [vmem:[#allocation2 + $0x38] sm:$0xff]  }
  0x3d   :  { %754 = vmatprep.subr.bf16.mxu0 %v844_v5  ;;  %792 = vmatprep.subr.bf16.mxu1 %v992_v0  ;;  %v862_v21 = vld [vmem:[%s1186_s4 + $0x18] sm:$0xff]   ;;  %v856_v22 = vld [vmem:[%s1182_s0] ss:$8 sps:$4 sm:$0xff]   ;;  %v865_v25 = vld [vmem:[%s1186_s4 + $0x30] sm:$0xff]  }
  0x3e   :  { %v863_v23 = vld [vmem:[%s1186_s4 + $0x20] sm:$0xff]   ;;  %v864_v24 = vld [vmem:[%s1186_s4 + $0x28] sm:$0xff]   ;;  %v866_v26 = vld [vmem:[%s1186_s4 + $0x38] sm:$0xff]  }
  0x3f   :  { %793 = vmatpush3.bf16.msra.mxu1 %v860_v16  ;;  %v867_v27 = vld [vmem:[#allocation4] sm:$0xff]   ;;  %v868_v28 = vld [vmem:[#allocation4 + $0x8] sm:$0xff]   ;;  %v869_v29 = vld [vmem:[#allocation4 + $0x10] sm:$0xff]  }
  0x40   :  { %755 = vmatpush3.bf16.msra.mxu0 %v845_v6  ;;  %794 = vmatprep.subr.bf16.mxu1 %v992_v0  ;;  %v870_v30 = vld [vmem:[#allocation4 + $0x18] sm:$0xff]   ;;  %v871_v31 = vld [vmem:[#allocation4 + $0x20] sm:$0xff]   ;;  %v872_v32 = vld [vmem:[#allocation4 + $0x28] sm:$0xff]  }
  0x41   :  { %756 = vmatprep.subr.bf16.mxu0 %v846_v7  ;;  %v693_v34 = vld [vmem:[%s1185_s3] ss:$0 sm:$0xff]  ;;  %v873_v45 = vld [vmem:[#allocation4 + $0x30] sm:$0xff]   ;;  %v874_v46 = vld [vmem:[#allocation4 + $0x38] sm:$0xff]  }
  0x42   :  { %v875_v47 = vld [vmem:[#allocation6] ss:$8 sps:$4 sm:$0xff]   ;;  %v877_v48 = vld [vmem:[#allocation6 + $0x4] ss:$8 sps:$4 sm:$0xff]   ;;  %v880_v49 = vld [vmem:[#allocation6 + $0x14] ss:$8 sps:$4 sm:$0xff]  }
  0x43   :  { %795 = vmatpush3.bf16.msra.mxu1 %v861_v19  ;;  %v878_v50 = vld [vmem:[#allocation6 + $0x10] ss:$8 sps:$4 sm:$0xff]   ;;  %v883_v51 = vld [vmem:[#allocation6 + $0x24] ss:$8 sps:$4 sm:$0xff]   ;;  %v881_v52 = vld [vmem:[#allocation6 + $0x20] ss:$8 sps:$4 sm:$0xff]  }
  0x44   :  { %757 = vmatpush3.bf16.msra.mxu0 %v847_v8  ;;  %796 = vmatprep.subr.bf16.mxu1 %v992_v0  ;;  %v886_v53 = vld [vmem:[#allocation6 + $0x34] ss:$8 sps:$4 sm:$0xff]   ;;  %v884_v54 = vld [vmem:[#allocation6 + $0x30] ss:$8 sps:$4 sm:$0xff]   ;;  %v889_v55 = vld [vmem:[#allocation6 + $0x44] ss:$8 sps:$4 sm:$0xff]  }
  0x45   :  { %758 = vmatprep.subr.bf16.mxu0 %v848_v9  ;;  %v887_v56 = vld [vmem:[#allocation6 + $0x40] ss:$8 sps:$4 sm:$0xff]   ;;  %v892_v57 = vld [vmem:[#allocation6 + $0x54] ss:$8 sps:$4 sm:$0xff]   ;;  %v890_v58 = vld [vmem:[#allocation6 + $0x50] ss:$8 sps:$4 sm:$0xff]  }
  0x46   :  { %v712_v59 = vld [vmem:[%s1187_s5] ss:$0 sm:$0xff]  ;;  %v383_v1 = vld [vmem:[%s1183_s1 + $0x8] sm:$0xff]  ;;  %v898_v9 = vld [vmem:[#allocation6 + $0x74] ss:$8 sps:$4 sm:$0xff]  }
  0x47   :  { %797 = vmatpush3.bf16.msra.mxu1 %v862_v21  ;;  %v382_v63 = vld [vmem:[%s1183_s1] sm:$0xff] }
  0x48   :  { %759 = vmatpush3.bf16.msra.mxu0 %v849_v10  ;;  %798 = vmatprep.subr.bf16.mxu1 %v992_v0  ;;  %v895_v7 = vld [vmem:[#allocation6 + $0x64] ss:$8 sps:$4 sm:$0xff]   ;;  %v893_v8 = vld [vmem:[#allocation6 + $0x60] ss:$8 sps:$4 sm:$0xff]   ;;  %v896_v10 = vld [vmem:[#allocation6 + $0x70] ss:$8 sps:$4 sm:$0xff]  }
  0x49   :  { %760 = vmatprep.subr.bf16.mxu0 %v850_v11  ;;  %v994_v11 = vmov 0  }
  0x4b   :  { %799 = vmatpush3.bf16.msra.mxu1 %v863_v23 }
  0x4c   :  { %761 = vmatpush3.bf16.msra.mxu0 %v851_v12  ;;  %800 = vmatprep.subr.bf16.mxu1 %v992_v0  ;;  %v721_v12 = vld [vmem:[%s1189_s7] ss:$0 sm:$0xff] }
  0x4d   :  { %762 = vmatprep.subr.bf16.mxu0 %v852_v15 }
  0x4f   :  { %801 = vmatpush3.bf16.msra.mxu1 %v864_v24 }
  0x50   :  { %763 = vmatpush3.bf16.msra.mxu0 %v853_v17  ;;  %802 = vmatprep.subr.bf16.mxu1 %v992_v0 }
  0x51   :  { %764 = vmatprep.subr.bf16.mxu0 %v854_v18 }
  0x53   :  { %803 = vmatpush3.bf16.msra.mxu1 %v865_v25  ;;  %v518_v25 = vld [vmem:[%s1191_s9] sm:$0x3] }
  0x54   :  { %765 = vmatpush3.bf16.msra.mxu0 %v855_v20  ;;  %804 = vmatprep.subr.bf16.mxu1 %v992_v0 }
  0x55   :  { %810 = vmatprep.subr.bf16.mxu0 %v992_v0 }
  0x57   :  { %259 = vmatmul.mubr.bf16.vlgmr.msra.gmra.mrb[0].mxu0 %v856_v22  ;;  %805 = vmatpush3.bf16.msra.mxu1 %v866_v26  ;;  %v520_v22 = vlaneseq }
  0x58   :  { %826 = vmatprep.mubr.msk.bf16.mxu0 %vm993_vm0, %v992_v0  ;;  %811 = vmatpush3.bf16.msra.mxu0 %v867_v27 }
  0x59   :  { %812 = vmatprep.subr.bf16.mxu0 %v992_v0  ;;  %610 = vmatprep.subr.bf16.mxu1 %v877_v48  ;;  %v521_v23 = vshrl.u32 %v520_v22, 7 }
  0x5b   :  { %v522_v24 = vsub.s32 0, %v521_v23  ;;  %v526_v26 = vsub.s32 1, %v521_v23 }
  0x5c   :  { %813 = vmatpush3.bf16.msra.mxu0 %v868_v28 }
  0x5d   :  { %814 = vmatprep.subr.bf16.mxu0 %v992_v0  ;;  %v523_v27 = vrot.slane %v518_v25, %v522_v24  ;;  %v527_v28 = vrot.slane %v518_v25, %v526_v26 }
  0x60   :  { %815 = vmatpush3.bf16.msra.mxu0 %v869_v29 }
  0x61   :  { %816 = vmatprep.subr.bf16.mxu0 %v992_v0 }
  0x64   :  { %817 = vmatpush3.bf16.msra.mxu0 %v870_v30 }
  0x65   :  { %818 = vmatprep.subr.bf16.mxu0 %v992_v0 }
  0x68   :  { %819 = vmatpush3.bf16.msra.mxu0 %v871_v31 }
  0x69   :  { %820 = vmatprep.subr.bf16.mxu0 %v992_v0 }
  0x6c   :  { %821 = vmatpush3.bf16.msra.mxu0 %v872_v32 }
  0x6d   :  { %822 = vmatprep.subr.bf16.mxu0 %v992_v0 }
  0x70   :  { %823 = vmatpush3.bf16.msra.mxu0 %v873_v45 }
  0x71   :  { %824 = vmatprep.subr.bf16.mxu0 %v992_v0 }
  0x74   :  { %825 = vmatpush3.bf16.msra.mxu0 %v874_v46 }
 0x12a   :  { %v766_v33 = vpop.f32.mrb[0].mxu0 }
 0x12b   :  { %v767_v35 = vpop.f32.mrb[1].mxu0 }
 0x12c   :  { %v768_v36 = vadd.f32 %v767_v35, %v766_v33  ;;  %v769_v37 = vpop.f32.mrb[2].mxu0 }
 0x12d   :  { %v770_v38 = vpop.f32.mrb[3].mxu0 }
 0x12e   :  { %v261_v39 = vadd.f32 %v768_v36, %v693_v34  ;;  %v771_v40 = vadd.f32 %v770_v38, %v769_v37 }
 0x130   :  { %v264_v41 = vadd.f32 %v771_v40, %v693_v34  ;;  %v267_v42 = vmax.f32 %v261_v39, 0.0 }
 0x132   :  { %v268_v43 = vmax.f32 %v264_v41, 0.0 }
 0x134   :  { %v269_v44 = vpack.c.bf16 %v268_v43, %v267_v42 }
 0x136   :  { %807 = vmatmul.mubr.bf16.vlgmr.msra.gmra.mrb[0].mxu1 %v269_v44 }
 0x137   :  { %611 = vmatpush1.bf16.msra.mxu1 %v875_v47  ;;  %642 = vmatprep.mubr.bf16.mxu1 %v994_v11 }
 0x138   :  { %612 = vmatprep.subr.bf16.mxu1 %v880_v49 }
 0x13b   :  { %613 = vmatpush1.bf16.msra.mxu1 %v878_v50 }
 0x13c   :  { %614 = vmatprep.subr.bf16.mxu1 %v883_v51 }
 0x13f   :  { %615 = vmatpush1.bf16.msra.mxu1 %v881_v52 }
 0x140   :  { %616 = vmatprep.subr.bf16.mxu1 %v886_v53 }
 0x143   :  { %617 = vmatpush1.bf16.msra.mxu1 %v884_v54 }
 0x144   :  { %618 = vmatprep.subr.bf16.mxu1 %v889_v55 }
 0x147   :  { %619 = vmatpush1.bf16.msra.mxu1 %v887_v56 }
 0x148   :  { %620 = vmatprep.subr.bf16.mxu1 %v892_v57 }
 0x14b   :  { %621 = vmatpush1.bf16.msra.mxu1 %v890_v58 }
 0x14c   :  { %622 = vmatprep.subr.bf16.mxu1 %v895_v7 }
 0x14f   :  { %623 = vmatpush1.bf16.msra.mxu1 %v893_v8 }
 0x150   :  { %624 = vmatprep.subr.bf16.mxu1 %v898_v9 }
 0x153   :  { %625 = vmatpush1.bf16.msra.mxu1 %v896_v10 }
 0x209   :  { %v375_v60 = vpop.f32.mrb[0].mxu1 }
 0x20a   :  { %v376_v61 = vadd.f32 %v712_v59, %v375_v60  ;;  %v808_v62 = vpop.f32.mrb[1].mxu1 }
 0x20b   :  { %v378_v0 = vpop.f32.mrb[2].mxu1 }
 0x20c   :  { %681 = vst [vmem:[%s1193_s11] sm:$0xff] %v376_v61  ;;  %v379_v2 = vadd.f32 %v712_v59, %v378_v0  ;;  %v809_v3 = vpop.f32.mrb[3].mxu1  ;;  %v384_v4 = vmul.f32 %v382_v63, %v376_v61 }
 0x20e   :  { %v385_v5 = vmul.f32 %v383_v1, %v379_v2  ;;  %682 = vst [vmem:[%s1193_s11 + $0x8] sm:$0xff] %v379_v2 }
 0x210   :  { %v386_v6 = vpack.c.bf16 %v385_v5, %v384_v4 }
 0x212   :  { %827 = vmatmul.mubr.bf16.vlgmr.msra.gmra.mrb[4].mxu0 %v386_v6 }
 0x2e5   :  { %v492_v13 = vpop.f32.mrb[4].mxu0 }
 0x2e6   :  { %v493_v14 = vadd.f32 %v721_v12, %v492_v13  ;;  %v828_v15 = vpop.f32.mrb[5].mxu0 }
 0x2e7   :  { %v495_v16 = vpop.f32.mrb[6].mxu0 }
 0x2e8   :  { %v496_v17 = vadd.f32 %v721_v12, %v495_v16  ;;  %v829_v18 = vpop.f32.mrb[7].mxu0  ;;  %v499_v19 = vmax.f32 %v493_v14, 0.0 }
 0x2ea   :  { %v500_v20 = vmax.f32 %v496_v17, 0.0 }
 0x2ec   :  { %v501_v21 = vpack.c.bf16 %v500_v20, %v499_v19 }
 0x2ee   :  { %643 = vmatmul.mubr.bf16.vlgmr.msra.gmra.mrb[4].mxu1 %v501_v21 }
 0x3c1   :  { %v644_v29 = vpop.f32.mrb[4].mxu1 }
 0x3c2   :  { %v645_v30 = vadd.f32 %v644_v29, %v523_v27  ;;  %v646_v31 = vpop.f32.mrb[5].mxu1 }
 0x3c3   :  { %v647_v32 = vadd.f32 %v646_v31, %v527_v28  ;;  %v648_v33 = vpop.f32.mrb[6].mxu1 }
 0x3c4   :  { %v746_v34 = vmul.f32 -1.442695, %v645_v30  ;;  %v649_v35 = vadd.f32 %v648_v33, %v523_v27  ;;  %v650_v36 = vpop.f32.mrb[7].mxu1 }
 0x3c5   :  { %v747_v37 = vmul.f32 -1.442695, %v647_v32  ;;  %v651_v38 = vadd.f32 %v650_v36, %v527_v28 }
 0x3c6   :  { %899 = vpow2.f32 %v746_v34  ;;  %v748_v39 = vmul.f32 -1.442695, %v649_v35 }
 0x3c7   :  { %901 = vpow2.f32 %v747_v37  ;;  %v749_v40 = vmul.f32 -1.442695, %v651_v38 }
 0x3c8   :  { %903 = vpow2.f32 %v748_v39 }
 0x3c9   :  { %905 = vpow2.f32 %v749_v40 }
 0x3d0   :  { %v900_v41 = vpop.eup %899 }
 0x3d1   :  { %v902_v42 = vpop.eup %901  ;;  %v665_v43 = vadd.f32 1.0, %v900_v41 }
 0x3d2   :  { %v904_v44 = vpop.eup %903  ;;  %v666_v45 = vadd.f32 1.0, %v902_v42 }
 0x3d3   :  { %v906_v46 = vpop.eup %905  ;;  %907 = vrcp.f32 %v665_v43  ;;  %v667_v47 = vadd.f32 1.0, %v904_v44 }
 0x3d4   :  { %909 = vrcp.f32 %v666_v45  ;;  %v668_v48 = vadd.f32 1.0, %v906_v46 }
 0x3d5   :  { %911 = vrcp.f32 %v667_v47 }
 0x3d6   :  { %913 = vrcp.f32 %v668_v48 }
 0x3dd   :  { %v908_v49 = vpop.eup %907 }
 0x3de   :  { %v910_v50 = vpop.eup %909  ;;  %677 = vst [vmem:[%s1192_s10] sm:$0xff] %v908_v49 }
 0x3df   :  { %v912_v51 = vpop.eup %911  ;;  %678 = vst [vmem:[%s1192_s10 + $0x8] sm:$0xff] %v910_v50 }
 0x3e0   :  { %v914_v52 = vpop.eup %913  ;;  %679 = vst [vmem:[%s1192_s10 + $0x10] sm:$0xff] %v912_v51 }
 0x3e1   :  { %680 = vst [vmem:[%s1192_s10 + $0x18] sm:$0xff] %v914_v52 }
 0x3e2   :  { %691 = vsyncpa [#allocation3], 1 }
 0x3e3   :  { %692 = vsyncpa [#allocation5], 1 }

</bundles_post_ra>
